<compile_context>
chip_gen: v6e
topology: v6e:2x2x1
jax: 0.10.0
libtpu: 0.0.40
codegen_flags: <defaults>
</compile_context>

<pallas_src>
import jax
import jax.numpy as jnp
from jax.experimental import pallas as pl
from jax.experimental.pallas import tpu as pltpu

HIDDEN = 512
LN_EPS = 1e-5
MAX_BATCH_TILE = 256   # fills the MXU on v6e/v7x; activations stay < 1 MiB of VMEM


def _layernorm(h, gamma, beta):
    mu = jnp.mean(h, axis=-1, keepdims=True)
    xc = h - mu
    var = jnp.mean(xc * xc, axis=-1, keepdims=True)
    inv = jax.lax.rsqrt(var + LN_EPS)
    return xc * inv * gamma + beta


def _mish(x):
    # mish(x) = x * tanh(softplus(x))
    # tanh(log(1+e^x)) = ((1+e^x)^2 - 1) / ((1+e^x)^2 + 1)   (exact rearrangement)
    # Single exp per element; exact divide (no approx reciprocal -> full f32 accuracy).
    # Clamp: for x > 20 the tanh(softplus(x)) factor is 1.0 to f32 precision and the
    # clamp keeps (1+e^x)^2 far from f32 overflow.
    e = jnp.exp(jnp.minimum(x, 20.0))
    q = (1.0 + e) * (1.0 + e)
    return x * ((q - 1.0) / (q + 1.0))


def actor_kernel(x_ref,
                 w1_ref, b1_ref, g1_ref, be1_ref,
                 w2_ref, b2_ref, g2_ref, be2_ref,
                 w3_ref, b3_ref,
                 o_ref):
    # Grid-invariant parameters: load once at the top of the body.
    w1 = w1_ref[...]; b1 = b1_ref[...]; g1 = g1_ref[...]; be1 = be1_ref[...]
    w2 = w2_ref[...]; b2 = b2_ref[...]; g2 = g2_ref[...]; be2 = be2_ref[...]
    w3 = w3_ref[...]; b3 = b3_ref[...]

    x = x_ref[...].astype(jnp.bfloat16)

    # --- NormedLinear 1: Linear -> LayerNorm -> Mish ---
    h = jnp.dot(x, w1, preferred_element_type=jnp.float32) + b1
    h = _mish(_layernorm(h, g1, be1))

    # --- NormedLinear 2: Linear -> LayerNorm -> Mish ---
    h = jnp.dot(h.astype(jnp.bfloat16), w2, preferred_element_type=jnp.float32) + b2
    h = _mish(_layernorm(h, g2, be2))

    # --- Output head: Linear -> Tanh ---
    y = jnp.dot(h.astype(jnp.bfloat16), w3, preferred_element_type=jnp.float32) + b3
    o_ref[...] = jnp.tanh(y).astype(o_ref.dtype)


def actor_forward(state, params, *, max_batch_tile=MAX_BATCH_TILE):
    """state: (B, state_size) float32 -> (B, action_size) float32."""
    (w1, b1, g1, be1, w2, b2, g2, be2, w3, b3) = params
    B, S = state.shape
    A = w3.shape[1]

    if B <= max_batch_tile:
        # Single grid step; block shape equals the full array, so no padding
        # or extra HBM copy of the input is needed.
        tile, B_pad = B, B
        x = state
    else:
        tile = max_batch_tile
        B_pad = ((B + tile - 1) // tile) * tile
        x = state if B_pad == B else jnp.pad(state, ((0, B_pad - B), (0, 0)))

    grid = (B_pad // tile,)

    def const_spec(shape):
        # grid-invariant operand (weights / biases / LN params)
        return pl.BlockSpec(shape, lambda i: (0,) * len(shape))

    out = pl.pallas_call(
        actor_kernel,
        out_shape=jax.ShapeDtypeStruct((B_pad, A), jnp.float32),
        grid_spec=pltpu.PrefetchScalarGridSpec(
            num_scalar_prefetch=0,
            grid=grid,
            in_specs=[
                pl.BlockSpec((tile, S), lambda i: (i, 0)),   # x tile
                const_spec((S, HIDDEN)),                     # w1 (bf16)
                const_spec((1, HIDDEN)),                     # b1
                const_spec((1, HIDDEN)),                     # gamma1
                const_spec((1, HIDDEN)),                     # beta1
                const_spec((HIDDEN, HIDDEN)),                # w2 (bf16)
                const_spec((1, HIDDEN)),                     # b2
                const_spec((1, HIDDEN)),                     # gamma2
                const_spec((1, HIDDEN)),                     # beta2
                const_spec((HIDDEN, A)),                     # w3 (bf16)
                const_spec((1, A)),                          # b3
            ],
            out_specs=pl.BlockSpec((tile, A), lambda i: (i, 0)),
        ),
        compiler_params=pltpu.CompilerParams(
            dimension_semantics=("parallel",)),
    )(x, w1, b1, g1, be1, w2, b2, g2, be2, w3, b3)

    return out[:B] if B_pad != B else out


def make_params(state_size, action_size, key):
    """Deterministic synthetic parameters.  Weights stored as (in, out) in
    bfloat16 (native MXU input dtype); biases / LayerNorm params in f32."""
    ks = jax.random.split(key, 3)

    w1 = (jax.random.normal(ks[0], (state_size, HIDDEN), jnp.float32) * 0.05
          ).astype(jnp.bfloat16)
    b1 = jnp.full((1, HIDDEN), 0.01, jnp.float32)
    g1 = jnp.ones((1, HIDDEN), jnp.float32)
    be1 = jnp.zeros((1, HIDDEN), jnp.float32)

    w2 = (jax.random.normal(ks[1], (HIDDEN, HIDDEN), jnp.float32) * 0.05
          ).astype(jnp.bfloat16)
    b2 = jnp.full((1, HIDDEN), -0.01, jnp.float32)
    g2 = jnp.ones((1, HIDDEN), jnp.float32)
    be2 = jnp.zeros((1, HIDDEN), jnp.float32)

    w3 = (jax.random.normal(ks[2], (HIDDEN, action_size), jnp.float32) * 0.05
          ).astype(jnp.bfloat16)
    b3 = jnp.zeros((1, action_size), jnp.float32)

    return (w1, b1, g1, be1, w2, b2, g2, be2, w3, b3)


def actor_reference(state, params):
    """Pure-JAX reference with the same precision policy (bf16 MXU inputs,
    f32 accumulation) and the exact Mish definition x * tanh(softplus(x))."""
    (w1, b1, g1, be1, w2, b2, g2, be2, w3, b3) = params

    def ln(h, g, be):
        mu = jnp.mean(h, -1, keepdims=True)
        var = jnp.mean((h - mu) ** 2, -1, keepdims=True)
        return (h - mu) * jax.lax.rsqrt(var + LN_EPS) * g + be

    def mish(x):
        return x * jnp.tanh(jax.nn.softplus(x))

    h = jnp.dot(state.astype(jnp.bfloat16), w1, preferred_element_type=jnp.float32) + b1
    h = mish(ln(h, g1, be1))
    h = jnp.dot(h.astype(jnp.bfloat16), w2, preferred_element_type=jnp.float32) + b2
    h = mish(ln(h, g2, be2))
    y = jnp.dot(h.astype(jnp.bfloat16), w3, preferred_element_type=jnp.float32) + b3
    return jnp.tanh(y)


if __name__ == "__main__":
    state_size, action_size, batch = 24, 4, 2

    key = jax.random.PRNGKey(0)
    kp, kx, kx2 = jax.random.split(key, 3)
    params = make_params(state_size, action_size, kp)

    # Tolerance: kernel and reference use identical math except for the
    # (mathematically exact) Mish rearrangement and bf16 matmul accumulation
    # order between the tiled kernel and the monolithic XLA reference.
    ATOL = RTOL = 2e-2

    # --- small-batch path: grid=(1,), no padding, no extra copies ---
    state = jax.random.normal(kx, (batch, state_size), jnp.float32)
    action = jax.block_until_ready(actor_forward(state, params))
    ref = actor_reference(state, params)
    assert action.shape == (batch, action_size)
    assert bool(jnp.all(jnp.abs(action) <= 1.0))
    assert jnp.allclose(action, ref, atol=ATOL, rtol=RTOL), (
        f"max abs err {jnp.max(jnp.abs(action - ref))}")

    # --- multi-tile path: batch > tile exercises the pipelined / parallel grid ---
    big_b = 3 * MAX_BATCH_TILE + 5
    big_state = jax.random.normal(kx2, (big_b, state_size), jnp.float32)
    big_action = jax.block_until_ready(actor_forward(big_state, params))
    big_ref = actor_reference(big_state, params)
    assert big_action.shape == (big_b, action_size)
    assert jnp.allclose(big_action, big_ref, atol=ATOL, rtol=RTOL), (
        f"max abs err {jnp.max(jnp.abs(big_action - big_ref))}")

    print("KERNEL_OK")
</pallas_src>

<mosaic_0001>
module attributes {stable_mosaic.version = 11 : i64} {
  func.func @actor_kernel(%arg0: i32, %arg1: memref<2x24xf32, #tpu.memory_space<vmem>>, %arg2: memref<24x512xbf16, #tpu.memory_space<vmem>>, %arg3: memref<1x512xf32, #tpu.memory_space<vmem>>, %arg4: memref<1x512xf32, #tpu.memory_space<vmem>>, %arg5: memref<1x512xf32, #tpu.memory_space<vmem>>, %arg6: memref<512x512xbf16, #tpu.memory_space<vmem>>, %arg7: memref<1x512xf32, #tpu.memory_space<vmem>>, %arg8: memref<1x512xf32, #tpu.memory_space<vmem>>, %arg9: memref<1x512xf32, #tpu.memory_space<vmem>>, %arg10: memref<512x4xbf16, #tpu.memory_space<vmem>>, %arg11: memref<1x4xf32, #tpu.memory_space<vmem>>, %arg12: memref<2x4xf32, #tpu.memory_space<vmem>>) attributes {dimension_semantics = [#tpu.dimension_semantics<parallel>], iteration_bounds = array<i64: 1>, scalar_prefetch = 0 : i64, scratch_operands = 0 : i64, tpu.core_type = #tpu.core_type<tc>, window_params = [{transform_indices = @transform_0, window_bounds = array<i64: 2, 24>}, {pipeline_mode = #tpu.pipeline_mode<synchronous>, transform_indices = @transform_1, window_bounds = array<i64: 24, 512>}, {pipeline_mode = #tpu.pipeline_mode<synchronous>, transform_indices = @transform_2, window_bounds = array<i64: 1, 512>}, {pipeline_mode = #tpu.pipeline_mode<synchronous>, transform_indices = @transform_3, window_bounds = array<i64: 1, 512>}, {pipeline_mode = #tpu.pipeline_mode<synchronous>, transform_indices = @transform_4, window_bounds = array<i64: 1, 512>}, {pipeline_mode = #tpu.pipeline_mode<synchronous>, transform_indices = @transform_5, window_bounds = array<i64: 512, 512>}, {pipeline_mode = #tpu.pipeline_mode<synchronous>, transform_indices = @transform_6, window_bounds = array<i64: 1, 512>}, {pipeline_mode = #tpu.pipeline_mode<synchronous>, transform_indices = @transform_7, window_bounds = array<i64: 1, 512>}, {pipeline_mode = #tpu.pipeline_mode<synchronous>, transform_indices = @transform_8, window_bounds = array<i64: 1, 512>}, {pipeline_mode = #tpu.pipeline_mode<synchronous>, transform_indices = @transform_9, window_bounds = array<i64: 512, 4>}, {pipeline_mode = #tpu.pipeline_mode<synchronous>, transform_indices = @transform_10, window_bounds = array<i64: 1, 4>}, {transform_indices = @transform_11, window_bounds = array<i64: 2, 4>}]} {
    %c0 = arith.constant 0 : index
    %c0_0 = arith.constant 0 : index
    %0 = vector.load %arg2[%c0, %c0_0] : memref<24x512xbf16, #tpu.memory_space<vmem>>, vector<24x512xbf16>
    %c0_1 = arith.constant 0 : index
    %c0_2 = arith.constant 0 : index
    %1 = vector.load %arg3[%c0_1, %c0_2] : memref<1x512xf32, #tpu.memory_space<vmem>>, vector<1x512xf32>
    %c0_3 = arith.constant 0 : index
    %c0_4 = arith.constant 0 : index
    %2 = vector.load %arg4[%c0_3, %c0_4] : memref<1x512xf32, #tpu.memory_space<vmem>>, vector<1x512xf32>
    %c0_5 = arith.constant 0 : index
    %c0_6 = arith.constant 0 : index
    %3 = vector.load %arg5[%c0_5, %c0_6] : memref<1x512xf32, #tpu.memory_space<vmem>>, vector<1x512xf32>
    %c0_7 = arith.constant 0 : index
    %c0_8 = arith.constant 0 : index
    %4 = vector.load %arg6[%c0_7, %c0_8] : memref<512x512xbf16, #tpu.memory_space<vmem>>, vector<512x512xbf16>
    %c0_9 = arith.constant 0 : index
    %c0_10 = arith.constant 0 : index
    %5 = vector.load %arg7[%c0_9, %c0_10] : memref<1x512xf32, #tpu.memory_space<vmem>>, vector<1x512xf32>
    %c0_11 = arith.constant 0 : index
    %c0_12 = arith.constant 0 : index
    %6 = vector.load %arg8[%c0_11, %c0_12] : memref<1x512xf32, #tpu.memory_space<vmem>>, vector<1x512xf32>
    %c0_13 = arith.constant 0 : index
    %c0_14 = arith.constant 0 : index
    %7 = vector.load %arg9[%c0_13, %c0_14] : memref<1x512xf32, #tpu.memory_space<vmem>>, vector<1x512xf32>
    %c0_15 = arith.constant 0 : index
    %c0_16 = arith.constant 0 : index
    %8 = vector.load %arg10[%c0_15, %c0_16] : memref<512x4xbf16, #tpu.memory_space<vmem>>, vector<512x4xbf16>
    %c0_17 = arith.constant 0 : index
    %c0_18 = arith.constant 0 : index
    %9 = vector.load %arg11[%c0_17, %c0_18] : memref<1x4xf32, #tpu.memory_space<vmem>>, vector<1x4xf32>
    %c0_19 = arith.constant 0 : index
    %c0_20 = arith.constant 0 : index
    %10 = vector.load %arg1[%c0_19, %c0_20] : memref<2x24xf32, #tpu.memory_space<vmem>>, vector<2x24xf32>
    %11 = arith.truncf %10 : vector<2x24xf32> to vector<2x24xbf16>
    %cst = arith.constant dense<0.000000e+00> : vector<2x512xf32>
    %12 = tpu.matmul %11, %0, %cst {dimension_numbers = #tpu.dot_dimension_numbers<[1], [0], [0], [1], [0, 0, 1, 1], [], []>} : vector<2x24xbf16>, vector<24x512xbf16>, vector<2x512xf32> -> vector<2x512xf32>
    %13 = vector.broadcast %1 : vector<1x512xf32> to vector<2x512xf32>
    %14 = arith.addf %12, %13 : vector<2x512xf32>
    %cst_21 = arith.constant dense<0.000000e+00> : vector<2xf32>
    %15 = vector.multi_reduction <add>, %14, %cst_21 [1] : vector<2x512xf32> to vector<2xf32>
    %16 = vector.shape_cast %15 : vector<2xf32> to vector<2x1xf32>
    %cst_22 = arith.constant 5.120000e+02 : f32
    %17 = vector.broadcast %cst_22 : f32 to vector<2x1xf32>
    %18 = arith.divf %16, %17 : vector<2x1xf32>
    %19 = vector.broadcast %18 : vector<2x1xf32> to vector<2x512xf32>
    %20 = arith.subf %14, %19 : vector<2x512xf32>
    %21 = arith.mulf %20, %20 : vector<2x512xf32>
    %cst_23 = arith.constant dense<0.000000e+00> : vector<2xf32>
    %22 = vector.multi_reduction <add>, %21, %cst_23 [1] : vector<2x512xf32> to vector<2xf32>
    %23 = vector.shape_cast %22 : vector<2xf32> to vector<2x1xf32>
    %cst_24 = arith.constant 5.120000e+02 : f32
    %24 = vector.broadcast %cst_24 : f32 to vector<2x1xf32>
    %25 = arith.divf %23, %24 : vector<2x1xf32>
    %cst_25 = arith.constant 9.99999974E-6 : f32
    %26 = vector.broadcast %cst_25 : f32 to vector<2x1xf32>
    %27 = arith.addf %25, %26 : vector<2x1xf32>
    %28 = math.rsqrt %27 : vector<2x1xf32>
    %29 = vector.broadcast %28 : vector<2x1xf32> to vector<2x512xf32>
    %30 = arith.mulf %20, %29 : vector<2x512xf32>
    %31 = vector.broadcast %2 : vector<1x512xf32> to vector<2x512xf32>
    %32 = arith.mulf %30, %31 : vector<2x512xf32>
    %33 = vector.broadcast %3 : vector<1x512xf32> to vector<2x512xf32>
    %34 = arith.addf %32, %33 : vector<2x512xf32>
    %cst_26 = arith.constant 2.000000e+01 : f32
    %35 = vector.broadcast %cst_26 : f32 to vector<2x512xf32>
    %36 = arith.minimumf %34, %35 : vector<2x512xf32>
    %37 = math.exp %36 : vector<2x512xf32>
    %cst_27 = arith.constant 1.000000e+00 : f32
    %38 = vector.broadcast %cst_27 : f32 to vector<2x512xf32>
    %39 = arith.addf %38, %37 : vector<2x512xf32>
    %cst_28 = arith.constant 1.000000e+00 : f32
    %40 = vector.broadcast %cst_28 : f32 to vector<2x512xf32>
    %41 = arith.addf %40, %37 : vector<2x512xf32>
    %42 = arith.mulf %39, %41 : vector<2x512xf32>
    %cst_29 = arith.constant 1.000000e+00 : f32
    %43 = vector.broadcast %cst_29 : f32 to vector<2x512xf32>
    %44 = arith.subf %42, %43 : vector<2x512xf32>
    %cst_30 = arith.constant 1.000000e+00 : f32
    %45 = vector.broadcast %cst_30 : f32 to vector<2x512xf32>
    %46 = arith.addf %42, %45 : vector<2x512xf32>
    %47 = arith.divf %44, %46 : vector<2x512xf32>
    %48 = arith.mulf %34, %47 : vector<2x512xf32>
    %49 = arith.truncf %48 : vector<2x512xf32> to vector<2x512xbf16>
    %cst_31 = arith.constant dense<0.000000e+00> : vector<2x512xf32>
    %50 = tpu.matmul %49, %4, %cst_31 {dimension_numbers = #tpu.dot_dimension_numbers<[1], [0], [0], [1], [0, 0, 1, 1], [], []>} : vector<2x512xbf16>, vector<512x512xbf16>, vector<2x512xf32> -> vector<2x512xf32>
    %51 = vector.broadcast %5 : vector<1x512xf32> to vector<2x512xf32>
    %52 = arith.addf %50, %51 : vector<2x512xf32>
    %cst_32 = arith.constant dense<0.000000e+00> : vector<2xf32>
    %53 = vector.multi_reduction <add>, %52, %cst_32 [1] : vector<2x512xf32> to vector<2xf32>
    %54 = vector.shape_cast %53 : vector<2xf32> to vector<2x1xf32>
    %cst_33 = arith.constant 5.120000e+02 : f32
    %55 = vector.broadcast %cst_33 : f32 to vector<2x1xf32>
    %56 = arith.divf %54, %55 : vector<2x1xf32>
    %57 = vector.broadcast %56 : vector<2x1xf32> to vector<2x512xf32>
    %58 = arith.subf %52, %57 : vector<2x512xf32>
    %59 = arith.mulf %58, %58 : vector<2x512xf32>
    %cst_34 = arith.constant dense<0.000000e+00> : vector<2xf32>
    %60 = vector.multi_reduction <add>, %59, %cst_34 [1] : vector<2x512xf32> to vector<2xf32>
    %61 = vector.shape_cast %60 : vector<2xf32> to vector<2x1xf32>
    %cst_35 = arith.constant 5.120000e+02 : f32
    %62 = vector.broadcast %cst_35 : f32 to vector<2x1xf32>
    %63 = arith.divf %61, %62 : vector<2x1xf32>
    %cst_36 = arith.constant 9.99999974E-6 : f32
    %64 = vector.broadcast %cst_36 : f32 to vector<2x1xf32>
    %65 = arith.addf %63, %64 : vector<2x1xf32>
    %66 = math.rsqrt %65 : vector<2x1xf32>
    %67 = vector.broadcast %66 : vector<2x1xf32> to vector<2x512xf32>
    %68 = arith.mulf %58, %67 : vector<2x512xf32>
    %69 = vector.broadcast %6 : vector<1x512xf32> to vector<2x512xf32>
    %70 = arith.mulf %68, %69 : vector<2x512xf32>
    %71 = vector.broadcast %7 : vector<1x512xf32> to vector<2x512xf32>
    %72 = arith.addf %70, %71 : vector<2x512xf32>
    %cst_37 = arith.constant 2.000000e+01 : f32
    %73 = vector.broadcast %cst_37 : f32 to vector<2x512xf32>
    %74 = arith.minimumf %72, %73 : vector<2x512xf32>
    %75 = math.exp %74 : vector<2x512xf32>
    %cst_38 = arith.constant 1.000000e+00 : f32
    %76 = vector.broadcast %cst_38 : f32 to vector<2x512xf32>
    %77 = arith.addf %76, %75 : vector<2x512xf32>
    %cst_39 = arith.constant 1.000000e+00 : f32
    %78 = vector.broadcast %cst_39 : f32 to vector<2x512xf32>
    %79 = arith.addf %78, %75 : vector<2x512xf32>
    %80 = arith.mulf %77, %79 : vector<2x512xf32>
    %cst_40 = arith.constant 1.000000e+00 : f32
    %81 = vector.broadcast %cst_40 : f32 to vector<2x512xf32>
    %82 = arith.subf %80, %81 : vector<2x512xf32>
    %cst_41 = arith.constant 1.000000e+00 : f32
    %83 = vector.broadcast %cst_41 : f32 to vector<2x512xf32>
    %84 = arith.addf %80, %83 : vector<2x512xf32>
    %85 = arith.divf %82, %84 : vector<2x512xf32>
    %86 = arith.mulf %72, %85 : vector<2x512xf32>
    %87 = arith.truncf %86 : vector<2x512xf32> to vector<2x512xbf16>
    %cst_42 = arith.constant dense<0.000000e+00> : vector<2x4xf32>
    %88 = tpu.matmul %87, %8, %cst_42 {dimension_numbers = #tpu.dot_dimension_numbers<[1], [0], [0], [1], [0, 0, 1, 1], [], []>} : vector<2x512xbf16>, vector<512x4xbf16>, vector<2x4xf32> -> vector<2x4xf32>
    %89 = vector.broadcast %9 : vector<1x4xf32> to vector<2x4xf32>
    %90 = arith.addf %88, %89 : vector<2x4xf32>
    %91 = math.tanh %90 : vector<2x4xf32>
    %c0_43 = arith.constant 0 : index
    %c0_44 = arith.constant 0 : index
    %92 = vector.load %arg12[%c0_43, %c0_44] : memref<2x4xf32, #tpu.memory_space<vmem>>, vector<2x4xf32>
    tpu.vector_store %arg12[%c0_43, %c0_44], %91 {strides = array<i32>} : memref<2x4xf32, #tpu.memory_space<vmem>>, vector<2x4xf32>,
    return
  }
  func.func @transform_0(%arg0: i32) -> (i32, i32) {
    %c0_i32 = arith.constant 0 : i32
    %c0_i32_0 = arith.constant 0 : i32
    return %arg0, %c0_i32 : i32, i32
  }
  func.func @transform_1(%arg0: i32) -> (i32, i32) {
    %c0_i32 = arith.constant 0 : i32
    %c0_i32_0 = arith.constant 0 : i32
    %c0_i32_1 = arith.constant 0 : i32
    return %c0_i32, %c0_i32_0 : i32, i32
  }
  func.func @transform_2(%arg0: i32) -> (i32, i32) {
    %c0_i32 = arith.constant 0 : i32
    %c0_i32_0 = arith.constant 0 : i32
    %c0_i32_1 = arith.constant 0 : i32
    return %c0_i32, %c0_i32_0 : i32, i32
  }
  func.func @transform_3(%arg0: i32) -> (i32, i32) {
    %c0_i32 = arith.constant 0 : i32
    %c0_i32_0 = arith.constant 0 : i32
    %c0_i32_1 = arith.constant 0 : i32
    return %c0_i32, %c0_i32_0 : i32, i32
  }
  func.func @transform_4(%arg0: i32) -> (i32, i32) {
    %c0_i32 = arith.constant 0 : i32
    %c0_i32_0 = arith.constant 0 : i32
    %c0_i32_1 = arith.constant 0 : i32
    return %c0_i32, %c0_i32_0 : i32, i32
  }
  func.func @transform_5(%arg0: i32) -> (i32, i32) {
    %c0_i32 = arith.constant 0 : i32
    %c0_i32_0 = arith.constant 0 : i32
    %c0_i32_1 = arith.constant 0 : i32
    return %c0_i32, %c0_i32_0 : i32, i32
  }
  func.func @transform_6(%arg0: i32) -> (i32, i32) {
    %c0_i32 = arith.constant 0 : i32
    %c0_i32_0 = arith.constant 0 : i32
    %c0_i32_1 = arith.constant 0 : i32
    return %c0_i32, %c0_i32_0 : i32, i32
  }
  func.func @transform_7(%arg0: i32) -> (i32, i32) {
    %c0_i32 = arith.constant 0 : i32
    %c0_i32_0 = arith.constant 0 : i32
    %c0_i32_1 = arith.constant 0 : i32
    return %c0_i32, %c0_i32_0 : i32, i32
  }
  func.func @transform_8(%arg0: i32) -> (i32, i32) {
    %c0_i32 = arith.constant 0 : i32
    %c0_i32_0 = arith.constant 0 : i32
    %c0_i32_1 = arith.constant 0 : i32
    return %c0_i32, %c0_i32_0 : i32, i32
  }
  func.func @transform_9(%arg0: i32) -> (i32, i32) {
    %c0_i32 = arith.constant 0 : i32
    %c0_i32_0 = arith.constant 0 : i32
    %c0_i32_1 = arith.constant 0 : i32
    return %c0_i32, %c0_i32_0 : i32, i32
  }
  func.func @transform_10(%arg0: i32) -> (i32, i32) {
    %c0_i32 = arith.constant 0 : i32
    %c0_i32_0 = arith.constant 0 : i32
    %c0_i32_1 = arith.constant 0 : i32
    return %c0_i32, %c0_i32_0 : i32, i32
  }
  func.func @transform_11(%arg0: i32) -> (i32, i32) {
    %c0_i32 = arith.constant 0 : i32
    %c0_i32_0 = arith.constant 0 : i32
    return %arg0, %c0_i32 : i32, i32
  }
}

</mosaic_0001>

<bundles_post_ra>
// kernel: tpu_custom_call.1
= control target key start
LH: loop header
LB: loop body
LE: loop exit
PB: predicated region body
PF: predicated region fallthrough
CT: control target
= control target key end

     0   :  { %16 = vsyncpa [#allocation3], 0  ;;  %s2641_s0 = inlined_call_operand.vmem [shape: f32[2,24], index: 0, kind: input, shape index: {}]   ;;  %s2642_s1 = inlined_call_operand.vmem [shape: bf16[24,512], index: 1, kind: input, shape index: {}]   ;;  %s2643_s2 = inlined_call_operand.vmem [shape: f32[1,512], index: 2, kind: input, shape index: {}]   ;;  %s2644_s3 = inlined_call_operand.vmem [shape: f32[1,512], index: 3, kind: input, shape index: {}]   ;;  %s2645_s4 = inlined_call_operand.vmem [shape: f32[1,512], index: 4, kind: input, shape index: {}]   ;;  %s2646_s5 = inlined_call_operand.hbm [shape: bf16[512,512], index: 5, kind: input, shape index: {}]   ;;  %s2647_s6 = inlined_call_operand.vmem [shape: f32[1,512], index: 6, kind: input, shape index: {}]   ;;  %s2648_s7 = inlined_call_operand.vmem [shape: f32[1,512], index: 7, kind: input, shape index: {}]   ;;  %s2649_s8 = inlined_call_operand.vmem [shape: f32[1,512], index: 8, kind: input, shape index: {}]   ;;  %s2650_s9 = inlined_call_operand.vmem [shape: bf16[512,4], index: 9, kind: input, shape index: {}]   ;;  %s2651_s10 = inlined_call_operand.vmem [shape: f32[1,4], index: 10, kind: input, shape index: {}]   ;;  %s2652_s11 = inlined_call_operand.hbm [shape: f32[2,4], index: 11, kind: output, shape index: {}]  }
   0x1   :  { %17 = vsyncpa [#allocation4], 0  ;;  %s2336_s17 = smov [#allocation2]  }
   0x2   :  { %s33_s18 = sshll.u32 %s2336_s17, 4  ;;  %s34_s18 = int_to_ptr.vmem [resolvable:$true] %s33_s18 }
   0x3   :  { %s2300_s19 = scalar_lea.vmem %s34_s18, 16384  ;;  %p2305_p1 = scmp.lt.s32.totalorder %s34_s18, %s34_s18 }
   0x4   :  { %p2301_p0 = scmp.ne.s32.totalorder %s34_s18, %s2300_s19  ;;  %p2306_p2 = scmp.lt.s32.totalorder %s2300_s19, %s2300_s19 }
   0x6   :  { %p2307_p3 = por %p2306_p2, %p2305_p1 }
   0x8   :  { %p2308_p4 = pnand %p2307_p3, %p2301_p0 }
   0xa   :  { %2311 = shalt.err (!%p2308_p4)
}
   0xb   :  { %s2337_s20 = smov 256   ;;  %s2338_s21 = smov 16  }
   0xc   :  { %39 = dma.hbm_to_vmem [thread:$0]  %s2646_s5, 16384, %s34_s18, [#allocation3], %s2337_s20, %s2337_s20, %s2338_s21  }
   0xd   :  { %2332 = dma.done.wait [#allocation3], 16384  }
   0xe   :  { %2333 = vsyncadd [#allocation3], 4294950912  ;;  %v2339_v0 = vmov 0   ;;  %v58_v1 = vld [vmem:[%s2642_s1 + $0x20] sm:$0xff]  ;;  %vm316_vm0 = vcmask 1043456   ;;  %v59_v2 = vld [vmem:[%s2642_s1 + $0x28] sm:$0xff]  ;;  %v262_v15 = vlaneseq }
   0xf   :  { %361 = vmatprep.mubr.bf16.mxu0 %v2339_v0  ;;  %402 = vmatprep.mubr.bf16.mxu1 %v2339_v0  ;;  %v1795_v3 = vcombine.high %v58_v1, %v58_v1  ;;  %v1797_v4 = vcombine.high %v59_v2, %v59_v2  ;;  %v1794_v5 = vcombine.low %v58_v1, %v58_v1  ;;  %v2024_v7 = vld [vmem:[%s2642_s1 + $0x4] ss:$16 sps:$4 sm:$0xff]   ;;  %v2026_v8 = vld [vmem:[%s2642_s1 + $0xc] ss:$16 sps:$4 sm:$0xff]   ;;  %v2028_v11 = vld [vmem:[%s2642_s1] ss:$16 sps:$4 sm:$0xff]  }
  0x10   :  { %v1796_v6 = vcombine.low %v59_v2, %v59_v2  ;;  %v2029_v12 = vld [vmem:[%s2642_s1 + $0x8] ss:$16 sps:$4 sm:$0xff]   ;;  %v259_v13 = vld [vmem:[%s2641_s0] sm:$0x3]  ;;  %vm312_vm1 = vcmask 195584   ;;  %v263_v16 = vshrl.u32 %v262_v15, 7 }
  0x11   :  { %1798 = vmatprep.subr.msk.bf16.mxu0 %vm316_vm0, %v1795_v3  ;;  %1800 = vmatprep.subr.msk.bf16.mxu1 %vm316_vm0, %v1797_v4  ;;  %v318_v9 = vsel %vm316_vm0, %v1794_v5, 0  ;;  %v260_v14 = vpack.c.bf16 %v259_v13, %v259_v13  ;;  %v60_v19 = vld [vmem:[%s2643_s2] sm:$0xf]  ;;  %vm411_vm2 = vcmask 1041408   ;;  %v2032_v62 = vld [vmem:[#allocation2 + $0xe4] ss:$16 sps:$4 sm:$0xff]  }
  0x12   :  { %v324_v10 = vsel %vm316_vm0, %v1796_v6, 0  ;;  %342 = vmatpush1.bf16.msra.mxu0 %v318_v9  ;;  %v2425_v17 = vsub.s32 0, %v263_v16  ;;  %v2427_v18 = vsub.s32 2, %v263_v16  ;;  %v2432_v20 = vsub.s32 1, %v263_v16  ;;  %v2035_v63 = vld [vmem:[#allocation2 + $0x2e4] ss:$16 sps:$4 sm:$0xff]  }
  0x13   :  { %383 = vmatpush1.bf16.msra.mxu1 %v324_v10  ;;  %343 = vmatprep.subr.bf16.mxu0 %v2024_v7  ;;  %v2436_v23 = vsub.s32 3, %v263_v16  ;;  %v2030_v0 = vld [vmem:[#allocation2 + $0xe0] ss:$16 sps:$4 sm:$0xff]   ;;  %v2038_v2 = vld [vmem:[#allocation2 + $0xc4] ss:$16 sps:$4 sm:$0xff]   ;;  %vm1773_vm3 = vcmask 25600  }
  0x14   :  { %384 = vmatprep.subr.bf16.mxu1 %v2026_v8  ;;  %v265_v21 = vrot.slane %v60_v19, %v2425_v17  ;;  %v273_v22 = vrot.slane %v60_v19, %v2427_v18  ;;  %v269_v24 = vrot.slane %v60_v19, %v2432_v20  ;;  %v2033_v1 = vld [vmem:[#allocation2 + $0x2e0] ss:$16 sps:$4 sm:$0xff]   ;;  %v2041_v5 = vld [vmem:[#allocation2 + $0x2c4] ss:$16 sps:$4 sm:$0xff]  }
  0x15   :  { %v277_v29 = vrot.slane %v60_v19, %v2436_v23  ;;  %v2036_v3 = vld [vmem:[#allocation2 + $0xc0] ss:$16 sps:$4 sm:$0xff]   ;;  %v2044_v6 = vld [vmem:[#allocation2 + $0xa4] ss:$16 sps:$4 sm:$0xff]  }
  0x16   :  { %344 = vmatpush1.bf16.msra.mxu0 %v2028_v11  ;;  %v2039_v4 = vld [vmem:[#allocation2 + $0x2c0] ss:$16 sps:$4 sm:$0xff]   ;;  %v2047_v7 = vld [vmem:[#allocation2 + $0x2a4] ss:$16 sps:$4 sm:$0xff]  }
  0x17   :  { %385 = vmatpush1.bf16.msra.mxu1 %v2029_v12  ;;  %1202 = vmatprep.subr.bf16.mxu0 %v2032_v62  ;;  %v2042_v8 = vld [vmem:[#allocation2 + $0xa0] ss:$16 sps:$4 sm:$0xff]   ;;  %v2050_v10 = vld [vmem:[#allocation2 + $0x84] ss:$16 sps:$4 sm:$0xff]  }
  0x18   :  { %1243 = vmatprep.subr.bf16.mxu1 %v2035_v63  ;;  %v2045_v9 = vld [vmem:[#allocation2 + $0x2a0] ss:$16 sps:$4 sm:$0xff]   ;;  %v2053_v11 = vld [vmem:[#allocation2 + $0x284] ss:$16 sps:$4 sm:$0xff]  }
  0x19   :  { %1799 = vmatmul.mubr.msk.bf16.vlgmr.msra.gmra.mxu0 %vm312_vm1, %v260_v14  ;;  %v2048_v12 = vld [vmem:[#allocation2 + $0x80] ss:$16 sps:$4 sm:$0xff]   ;;  %v2059_v15 = vld [vmem:[#allocation2 + $0x264] ss:$16 sps:$4 sm:$0xff]  }
  0x1a   :  { %1801 = vmatmul.mubr.msk.bf16.vlgmr.msra.gmra.mxu1 %vm312_vm1, %v260_v14  ;;  %1203 = vmatpush1.bf16.msra.mxu0 %v2030_v0  ;;  %v2051_v13 = vld [vmem:[#allocation2 + $0x280] ss:$16 sps:$4 sm:$0xff]   ;;  %v2056_v14 = vld [vmem:[#allocation2 + $0x64] ss:$16 sps:$4 sm:$0xff]  }
  0x1b   :  { %1244 = vmatpush1.bf16.msra.mxu1 %v2033_v1  ;;  %1204 = vmatprep.subr.bf16.mxu0 %v2038_v2  ;;  %v2054_v16 = vld [vmem:[#allocation2 + $0x60] ss:$16 sps:$4 sm:$0xff]   ;;  %v2116_v62 = vld [vmem:[#allocation2 + $0x124] ss:$16 sps:$4 sm:$0xff]  }
  0x1c   :  { %1245 = vmatprep.subr.bf16.mxu1 %v2041_v5  ;;  %v2057_v19 = vld [vmem:[#allocation2 + $0x260] ss:$16 sps:$4 sm:$0xff]   ;;  %v2119_v63 = vld [vmem:[#allocation2 + $0x324] ss:$16 sps:$4 sm:$0xff]  }
  0x1d   :  { %v2114_v0 = vld [vmem:[#allocation2 + $0x120] ss:$16 sps:$4 sm:$0xff]   ;;  %v2122_v2 = vld [vmem:[#allocation2 + $0x104] ss:$16 sps:$4 sm:$0xff]  }
  0x1e   :  { %1205 = vmatpush1.bf16.msra.mxu0 %v2036_v3  ;;  %v2117_v1 = vld [vmem:[#allocation2 + $0x320] ss:$16 sps:$4 sm:$0xff]   ;;  %v2125_v3 = vld [vmem:[#allocation2 + $0x304] ss:$16 sps:$4 sm:$0xff]  }
  0x1f   :  { %1246 = vmatpush1.bf16.msra.mxu1 %v2039_v4  ;;  %1206 = vmatprep.subr.bf16.mxu0 %v2044_v6  ;;  %v2120_v4 = vld [vmem:[#allocation2 + $0x100] ss:$16 sps:$4 sm:$0xff]   ;;  %v2128_v6 = vld [vmem:[#allocation2 + $0xec] ss:$16 sps:$4 sm:$0xff]  }
  0x20   :  { %1247 = vmatprep.subr.bf16.mxu1 %v2047_v7  ;;  %v2123_v5 = vld [vmem:[#allocation2 + $0x300] ss:$16 sps:$4 sm:$0xff]   ;;  %v2131_v7 = vld [vmem:[#allocation2 + $0x2ec] ss:$16 sps:$4 sm:$0xff]  }
  0x22   :  { %1207 = vmatpush1.bf16.msra.mxu0 %v2042_v8 }
  0x23   :  { %1248 = vmatpush1.bf16.msra.mxu1 %v2045_v9  ;;  %1208 = vmatprep.subr.bf16.mxu0 %v2050_v10 }
  0x24   :  { %1249 = vmatprep.subr.bf16.mxu1 %v2053_v11  ;;  %v61_v11 = vld [vmem:[%s2644_s3] sm:$0xf] }
  0x26   :  { %1209 = vmatpush1.bf16.msra.mxu0 %v2048_v12  ;;  %v62_v12 = vld [vmem:[%s2645_s4] sm:$0xf] }
  0x27   :  { %1250 = vmatpush1.bf16.msra.mxu1 %v2051_v13  ;;  %1210 = vmatprep.subr.bf16.mxu0 %v2056_v14  ;;  %v455_v13 = vrot.slane %v61_v11, %v2432_v20  ;;  %v463_v14 = vrot.slane %v61_v11, %v2436_v23 }
  0x28   :  { %1251 = vmatprep.subr.bf16.mxu1 %v2059_v15  ;;  %v451_v15 = vrot.slane %v61_v11, %v2425_v17 }
  0x2a   :  { %1211 = vmatpush1.bf16.msra.mxu0 %v2054_v16  ;;  %v459_v16 = vrot.slane %v61_v11, %v2427_v18 }
  0x2b   :  { %1252 = vmatpush1.bf16.msra.mxu1 %v2057_v19 }
  0xd9   :  { %v363_v25 = vpop.f32.mrf.mxu0 }
  0xda   :  { %v404_v26 = vpop.f32.mrf.mxu1  ;;  %v364_v27 = vadd.f32 %v363_v25, %v265_v21  ;;  %v2062_v21 = vld [vmem:[#allocation2 + $0x44] ss:$16 sps:$4 sm:$0xff]   ;;  %v2063_v25 = vld [vmem:[#allocation2 + $0x240] ss:$16 sps:$4 sm:$0xff]  }
  0xdb   :  { %v405_v28 = vadd.f32 %v404_v26, %v273_v22  ;;  %v365_v30 = vpop.f32.mrf.mxu0  ;;  %v2065_v22 = vld [vmem:[#allocation2 + $0x244] ss:$16 sps:$4 sm:$0xff]   ;;  %1212 = vmatprep.subr.bf16.mxu0 %v2062_v21  ;;  %v480_v21 = vrot.slane %v62_v12, %v2432_v20 }
  0xdc   :  { %v406_v31 = vpop.f32.mrf.mxu1  ;;  %v366_v32 = vadd.f32 %v365_v30, %v269_v24  ;;  %v412_v35 = vsel %vm411_vm2, %v364_v27, 0.0  ;;  %v2060_v24 = vld [vmem:[#allocation2 + $0x40] ss:$16 sps:$4 sm:$0xff]   ;;  %1253 = vmatprep.subr.bf16.mxu1 %v2065_v22  ;;  %v2068_v26 = vld [vmem:[#allocation2 + $0x24] ss:$16 sps:$4 sm:$0xff]   ;;  %v488_v22 = vrot.slane %v62_v12, %v2436_v23 }
  0xdd   :  { %v367_v33 = vpop.f32.mrf.mxu0  ;;  %v415_v36 = vsel %vm411_vm2, %v405_v28, 0.0  ;;  %v407_v38 = vadd.f32 %v406_v31, %v277_v29  ;;  %1213 = vmatpush1.bf16.msra.mxu0 %v2060_v24  ;;  %1254 = vmatpush1.bf16.msra.mxu1 %v2063_v25  ;;  %v2069_v29 = vld [vmem:[#allocation2 + $0x220] ss:$16 sps:$4 sm:$0xff]   ;;  %v2074_v30 = vld [vmem:[#allocation2 + $0x4] ss:$16 sps:$4 sm:$0xff]   ;;  %v476_v24 = vrot.slane %v62_v12, %v2425_v17  ;;  %v484_v25 = vrot.slane %v62_v12, %v2427_v18 }
  0xde   :  { %v408_v34 = vpop.f32.mrf.mxu1  ;;  %v413_v37 = vsel %vm411_vm2, %v366_v32, 0.0  ;;  %1214 = vmatprep.subr.bf16.mxu0 %v2068_v26  ;;  %v2077_v31 = vld [vmem:[#allocation2 + $0x204] ss:$16 sps:$4 sm:$0xff]   ;;  %v2075_v33 = vld [vmem:[#allocation2 + $0x200] ss:$16 sps:$4 sm:$0xff]  }
  0xdf   :  { %v414_v39 = vadd.f32 %v413_v37, %v412_v35  ;;  %v368_v40 = vpop.f32.mrf.mxu0  ;;  %v417_v43 = vsel %vm411_vm2, %v407_v38, 0.0  ;;  %v2080_v34 = vld [vmem:[#allocation2 + $0x1e4] ss:$16 sps:$4 sm:$0xff]   ;;  %v2081_v37 = vld [vmem:[#allocation2 + $0x3e0] ss:$16 sps:$4 sm:$0xff]  }
  0xe0   :  { %v409_v41 = vpop.f32.mrf.mxu1  ;;  %v2083_v35 = vld [vmem:[#allocation2 + $0x3e4] ss:$16 sps:$4 sm:$0xff]   ;;  %v2084_v40 = vld [vmem:[#allocation2 + $0x1c0] ss:$16 sps:$4 sm:$0xff]  }
  0xe1   :  { %v416_v42 = vadd.f32 %v415_v36, %v414_v39  ;;  %v2078_v36 = vld [vmem:[#allocation2 + $0x1e0] ss:$16 sps:$4 sm:$0xff]   ;;  %v2089_v39 = vld [vmem:[#allocation2 + $0x3c4] ss:$16 sps:$4 sm:$0xff]  }
  0xe2   :  { %v2087_v41 = vld [vmem:[#allocation2 + $0x3c0] ss:$16 sps:$4 sm:$0xff]  }
  0xe3   :  { %v418_v44 = vadd.f32 %v417_v43, %v416_v42  ;;  %v2092_v42 = vld [vmem:[#allocation2 + $0x1a4] ss:$16 sps:$4 sm:$0xff]  }
  0xe4   :  { %v2095_v43 = vld [vmem:[#allocation2 + $0x3a4] ss:$16 sps:$4 sm:$0xff]  }
  0xe5   :  { %419 = vadd.xlane.f32.xlu0 %v418_v44  ;;  %v2090_v44 = vld [vmem:[#allocation2 + $0x1a0] ss:$16 sps:$4 sm:$0xff]  }
 0x16e   :  { %v420_v45 = vpop.xlane.xlu0 %419 }
 0x16f   :  { %v422_v46 = vmul.f32 0.001953125, %v420_v45  ;;  %v2093_v45 = vld [vmem:[#allocation2 + $0x3a0] ss:$16 sps:$4 sm:$0xff]  }
 0x171   :  { %v2444_v47 = vsub.f32 %v364_v27, %v422_v46  ;;  %v2446_v48 = vsub.f32 %v366_v32, %v422_v46  ;;  %v2448_v49 = vsub.f32 %v405_v28, %v422_v46  ;;  %v2450_v50 = vsub.f32 %v407_v38, %v422_v46  ;;  %v2071_v27 = vld [vmem:[#allocation2 + $0x224] ss:$16 sps:$4 sm:$0xff]   ;;  %v2066_v28 = vld [vmem:[#allocation2 + $0x20] ss:$16 sps:$4 sm:$0xff]  }
 0x172   :  { %1255 = vmatprep.subr.bf16.mxu1 %v2071_v27  ;;  %1215 = vmatpush1.bf16.msra.mxu0 %v2066_v28  ;;  %v2072_v32 = vld [vmem:[#allocation2] ss:$16 sps:$4 sm:$0xff]   ;;  %v2086_v38 = vld [vmem:[#allocation2 + $0x1c4] ss:$16 sps:$4 sm:$0xff]  }
 0x173   :  { %v427_v51 = vmul.f32 %v2444_v47, %v2444_v47  ;;  %v428_v52 = vmul.f32 %v2446_v48, %v2446_v48  ;;  %v429_v53 = vmul.f32 %v2448_v49, %v2448_v49  ;;  %v430_v54 = vmul.f32 %v2450_v50, %v2450_v50  ;;  %1256 = vmatpush1.bf16.msra.mxu1 %v2069_v29  ;;  %v2098_v46 = vld [vmem:[#allocation2 + $0x184] ss:$16 sps:$4 sm:$0xff]  }
 0x174   :  { %1216 = vmatprep.subr.bf16.mxu0 %v2074_v30  ;;  %1257 = vmatprep.subr.bf16.mxu1 %v2077_v31 }
 0x175   :  { %v431_v55 = vsel %vm411_vm2, %v427_v51, 0.0  ;;  %v432_v56 = vsel %vm411_vm2, %v428_v52, 0.0  ;;  %v434_v58 = vsel %vm411_vm2, %v429_v53, 0.0  ;;  %v436_v60 = vsel %vm411_vm2, %v430_v54, 0.0  ;;  %v2101_v51 = vld [vmem:[#allocation2 + $0x384] ss:$16 sps:$4 sm:$0xff]  }
 0x176   :  { %v433_v57 = vadd.f32 %v432_v56, %v431_v55  ;;  %1217 = vmatpush1.bf16.msra.mxu0 %v2072_v32  ;;  %v2096_v52 = vld [vmem:[#allocation2 + $0x180] ss:$16 sps:$4 sm:$0xff]   ;;  %v2104_v54 = vld [vmem:[#allocation2 + $0x164] ss:$16 sps:$4 sm:$0xff]  }
 0x177   :  { %1258 = vmatpush1.bf16.msra.mxu1 %v2075_v33  ;;  %1218 = vmatprep.subr.bf16.mxu0 %v2080_v34  ;;  %v2099_v53 = vld [vmem:[#allocation2 + $0x380] ss:$16 sps:$4 sm:$0xff]   ;;  %v2107_v55 = vld [vmem:[#allocation2 + $0x364] ss:$16 sps:$4 sm:$0xff]  }
 0x178   :  { %v435_v59 = vadd.f32 %v434_v58, %v433_v57  ;;  %1259 = vmatprep.subr.bf16.mxu1 %v2083_v35  ;;  %v2102_v56 = vld [vmem:[#allocation2 + $0x160] ss:$16 sps:$4 sm:$0xff]   ;;  %v2110_v58 = vld [vmem:[#allocation2 + $0x144] ss:$16 sps:$4 sm:$0xff]  }
 0x179   :  { %v2105_v57 = vld [vmem:[#allocation2 + $0x360] ss:$16 sps:$4 sm:$0xff]  }
 0x17a   :  { %v437_v61 = vadd.f32 %v436_v60, %v435_v59  ;;  %1219 = vmatpush2.bf16.msra.mxu0 %v2078_v36  ;;  %v2113_v59 = vld [vmem:[#allocation2 + $0x344] ss:$16 sps:$4 sm:$0xff]   ;;  %v2108_v60 = vld [vmem:[#allocation2 + $0x140] ss:$16 sps:$4 sm:$0xff]  }
 0x17b   :  { %1260 = vmatpush2.bf16.msra.mxu1 %v2081_v37  ;;  %1220 = vmatprep.subr.bf16.mxu0 %v2086_v38 }
 0x17c   :  { %438 = vadd.xlane.f32.xlu0 %v437_v61  ;;  %1261 = vmatprep.subr.bf16.mxu1 %v2089_v39  ;;  %v2111_v61 = vld [vmem:[#allocation2 + $0x340] ss:$16 sps:$4 sm:$0xff]  }
 0x17e   :  { %1221 = vmatpush2.bf16.msra.mxu0 %v2084_v40 }
 0x17f   :  { %1262 = vmatpush2.bf16.msra.mxu1 %v2087_v41  ;;  %1222 = vmatprep.subr.bf16.mxu0 %v2092_v42 }
 0x180   :  { %1263 = vmatprep.subr.bf16.mxu1 %v2095_v43 }
 0x182   :  { %1223 = vmatpush2.bf16.msra.mxu0 %v2090_v44 }
 0x183   :  { %1264 = vmatpush2.bf16.msra.mxu1 %v2093_v45  ;;  %1224 = vmatprep.subr.bf16.mxu0 %v2098_v46 }
 0x184   :  { %1265 = vmatprep.subr.bf16.mxu1 %v2101_v51 }
 0x186   :  { %1225 = vmatpush2.bf16.msra.mxu0 %v2096_v52 }
 0x187   :  { %1266 = vmatpush2.bf16.msra.mxu1 %v2099_v53  ;;  %1226 = vmatprep.subr.bf16.mxu0 %v2104_v54 }
 0x188   :  { %1267 = vmatprep.subr.bf16.mxu1 %v2107_v55 }
 0x18a   :  { %1227 = vmatpush2.bf16.msra.mxu0 %v2102_v56 }
 0x18b   :  { %1268 = vmatpush2.bf16.msra.mxu1 %v2105_v57  ;;  %1228 = vmatprep.subr.bf16.mxu0 %v2110_v58 }
 0x18c   :  { %1269 = vmatprep.subr.bf16.mxu1 %v2113_v59 }
 0x18e   :  { %1229 = vmatpush2.bf16.msra.mxu0 %v2108_v60 }
 0x18f   :  { %1270 = vmatpush2.bf16.msra.mxu1 %v2111_v61  ;;  %1230 = vmatprep.subr.bf16.mxu0 %v2116_v62 }
 0x190   :  { %1271 = vmatprep.subr.bf16.mxu1 %v2119_v63 }
 0x192   :  { %1231 = vmatpush2.bf16.msra.mxu0 %v2114_v0 }
 0x193   :  { %1272 = vmatpush2.bf16.msra.mxu1 %v2117_v1  ;;  %1232 = vmatprep.subr.bf16.mxu0 %v2122_v2 }
 0x194   :  { %1273 = vmatprep.subr.bf16.mxu1 %v2125_v3 }
 0x196   :  { %1233 = vmatpush2.bf16.msra.mxu0 %v2120_v4 }
 0x197   :  { %1274 = vmatpush2.bf16.msra.mxu1 %v2123_v5  ;;  %1284 = vmatprep.subr.bf16.mxu0 %v2128_v6 }
 0x198   :  { %1325 = vmatprep.subr.bf16.mxu1 %v2131_v7 }
 0x205   :  { %v439_v8 = vpop.xlane.xlu0 %438 }
 0x206   :  { %v440_v9 = vmul.f32 0.001953125, %v439_v8 }
 0x208   :  { %v441_v10 = vadd.f32 1e-05, %v440_v9 }
 0x20a   :  { %2254 = vrsqrt.f32 %v441_v10 }
 0x217   :  { %v2255_v19 = vpop.eup %2254 }
 0x218   :  { %v444_v26 = vmul.f32 %v2255_v19, %v2446_v48  ;;  %v446_v27 = vmul.f32 %v2255_v19, %v2450_v50  ;;  %v443_v28 = vmul.f32 %v2255_v19, %v2444_v47  ;;  %v445_v29 = vmul.f32 %v2255_v19, %v2448_v49  ;;  %v2129_v19 = vld [vmem:[#allocation2 + $0x2e8] ss:$16 sps:$4 sm:$0xff]  }
 0x21a   :  { %v469_v30 = vmul.f32 %v455_v13, %v444_v26  ;;  %v471_v31 = vmul.f32 %v463_v14, %v446_v27  ;;  %v468_v32 = vmul.f32 %v451_v15, %v443_v28  ;;  %v470_v33 = vmul.f32 %v459_v16, %v445_v29  ;;  %v2126_v15 = vld [vmem:[#allocation2 + $0xe8] ss:$16 sps:$4 sm:$0xff]   ;;  %v2140_v28 = vld [vmem:[#allocation2 + $0xac] ss:$16 sps:$4 sm:$0xff]  }
 0x21b   :  { %v2132_v26 = vld [vmem:[#allocation2 + $0xc8] ss:$16 sps:$4 sm:$0xff]   ;;  %v2143_v29 = vld [vmem:[#allocation2 + $0x2ac] ss:$16 sps:$4 sm:$0xff]  }
 0x21c   :  { %v494_v34 = vadd.f32 %v480_v21, %v469_v30  ;;  %v496_v35 = vadd.f32 %v488_v22, %v471_v31  ;;  %v493_v36 = vadd.f32 %v476_v24, %v468_v32  ;;  %v495_v37 = vadd.f32 %v484_v25, %v470_v33  ;;  %v2134_v24 = vld [vmem:[#allocation2 + $0xcc] ss:$16 sps:$4 sm:$0xff]   ;;  %v2135_v27 = vld [vmem:[#allocation2 + $0x2c8] ss:$16 sps:$4 sm:$0xff]  }
 0x21d   :  { %v2137_v25 = vld [vmem:[#allocation2 + $0x2cc] ss:$16 sps:$4 sm:$0xff]   ;;  %v2138_v30 = vld [vmem:[#allocation2 + $0xa8] ss:$16 sps:$4 sm:$0xff]  }
 0x21e   :  { %v498_v38 = vmin.f32 %v494_v34, 20.0  ;;  %v500_v39 = vmin.f32 %v496_v35, 20.0  ;;  %v497_v40 = vmin.f32 %v493_v36, 20.0  ;;  %v499_v41 = vmin.f32 %v495_v37, 20.0  ;;  %v2141_v31 = vld [vmem:[#allocation2 + $0x2a8] ss:$16 sps:$4 sm:$0xff]  }
 0x21f   :  { %v2146_v32 = vld [vmem:[#allocation2 + $0x8c] ss:$16 sps:$4 sm:$0xff]  }
 0x220   :  { %v503_v42 = vmul.f32 1.442695, %v498_v38  ;;  %v507_v48 = vmul.f32 1.442695, %v500_v39  ;;  %v501_v43 = vmul.f32 1.442695, %v497_v40 }
 0x221   :  { %v505_v50 = vmul.f32 1.442695, %v499_v41  ;;  %v2149_v33 = vld [vmem:[#allocation2 + $0x28c] ss:$16 sps:$4 sm:$0xff]   ;;  %v2150_v38 = vld [vmem:[#allocation2 + $0x68] ss:$16 sps:$4 sm:$0xff]  }
 0x222   :  { %2256 = vpow2.f32 %v503_v42  ;;  %v2153_v39 = vld [vmem:[#allocation2 + $0x268] ss:$16 sps:$4 sm:$0xff]   ;;  %v2158_v40 = vld [vmem:[#allocation2 + $0x4c] ss:$16 sps:$4 sm:$0xff]  }
 0x223   :  { %2258 = vpow2.f32 %v507_v48  ;;  %v2161_v41 = vld [vmem:[#allocation2 + $0x24c] ss:$16 sps:$4 sm:$0xff]   ;;  %v2156_v42 = vld [vmem:[#allocation2 + $0x48] ss:$16 sps:$4 sm:$0xff]  }
 0x224   :  { %2260 = vpow2.f32 %v501_v43  ;;  %v2159_v48 = vld [vmem:[#allocation2 + $0x248] ss:$16 sps:$4 sm:$0xff]   ;;  %v2164_v43 = vld [vmem:[#allocation2 + $0x2c] ss:$16 sps:$4 sm:$0xff]  }
 0x225   :  { %2262 = vpow2.f32 %v505_v50  ;;  %v2167_v50 = vld [vmem:[#allocation2 + $0x22c] ss:$16 sps:$4 sm:$0xff]  }
 0x22f   :  { %v2257_v47 = vpop.eup %2256 }
 0x230   :  { %v2259_v49 = vpop.eup %2258  ;;  %v510_v44 = vadd.f32 1.0, %v2257_v47  ;;  %v2162_v47 = vld [vmem:[#allocation2 + $0x28] ss:$16 sps:$4 sm:$0xff]  }
 0x231   :  { %v2261_v45 = vpop.eup %2260  ;;  %v512_v46 = vadd.f32 1.0, %v2259_v49  ;;  %v2165_v49 = vld [vmem:[#allocation2 + $0x228] ss:$16 sps:$4 sm:$0xff]  }
 0x232   :  { %v2263_v51 = vpop.eup %2262  ;;  %v514_v52 = vmul.f32 %v510_v44, %v510_v44  ;;  %v509_v53 = vadd.f32 1.0, %v2261_v45  ;;  %v2170_v44 = vld [vmem:[#allocation2 + $0xc] ss:$16 sps:$4 sm:$0xff]  }
 0x233   :  { %v516_v54 = vmul.f32 %v512_v46, %v512_v46  ;;  %v511_v55 = vadd.f32 1.0, %v2263_v51  ;;  %v2173_v45 = vld [vmem:[#allocation2 + $0x20c] ss:$16 sps:$4 sm:$0xff]   ;;  %v2168_v46 = vld [vmem:[#allocation2 + $0x8] ss:$16 sps:$4 sm:$0xff]  }
 0x234   :  { %v522_v56 = vadd.f32 1.0, %v514_v52  ;;  %v513_v57 = vmul.f32 %v509_v53, %v509_v53  ;;  %v1803_v62 = vadd.f32 -1.0, %v514_v52  ;;  %v2171_v51 = vld [vmem:[#allocation2 + $0x208] ss:$16 sps:$4 sm:$0xff]   ;;  %v2176_v52 = vld [vmem:[#allocation2 + $0x1ec] ss:$16 sps:$4 sm:$0xff]  }
 0x235   :  { %v524_v58 = vadd.f32 1.0, %v516_v54  ;;  %v515_v59 = vmul.f32 %v511_v55, %v511_v55  ;;  %v1805_v0 = vadd.f32 -1.0, %v516_v54  ;;  %v2179_v53 = vld [vmem:[#allocation2 + $0x3ec] ss:$16 sps:$4 sm:$0xff]   ;;  %v2174_v54 = vld [vmem:[#allocation2 + $0x1e8] ss:$16 sps:$4 sm:$0xff]  }
 0x236   :  { %2264 = vrcp.f32 %v522_v56  ;;  %v521_v60 = vadd.f32 1.0, %v513_v57  ;;  %v1802_v3 = vadd.f32 -1.0, %v513_v57  ;;  %v2177_v55 = vld [vmem:[#allocation2 + $0x3e8] ss:$16 sps:$4 sm:$0xff]   ;;  %v2182_v56 = vld [vmem:[#allocation2 + $0x1cc] ss:$16 sps:$4 sm:$0xff]  }
 0x237   :  { %2266 = vrcp.f32 %v524_v58  ;;  %v523_v61 = vadd.f32 1.0, %v515_v59  ;;  %v1804_v6 = vadd.f32 -1.0, %v515_v59  ;;  %v2185_v57 = vld [vmem:[#allocation2 + $0x3cc] ss:$16 sps:$4 sm:$0xff]   ;;  %v2180_v58 = vld [vmem:[#allocation2 + $0x1c8] ss:$16 sps:$4 sm:$0xff]  }
 0x238   :  { %2268 = vrcp.f32 %v521_v60  ;;  %v2183_v59 = vld [vmem:[#allocation2 + $0x3c8] ss:$16 sps:$4 sm:$0xff]   ;;  %v2188_v60 = vld [vmem:[#allocation2 + $0x1ac] ss:$16 sps:$4 sm:$0xff]  }
 0x239   :  { %2270 = vrcp.f32 %v523_v61  ;;  %v2191_v61 = vld [vmem:[#allocation2 + $0x3ac] ss:$16 sps:$4 sm:$0xff]  }
 0x243   :  { %v2265_v63 = vpop.eup %2264 }
 0x244   :  { %v2267_v1 = vpop.eup %2266  ;;  %v528_v2 = vmul.f32 %v2265_v63, %v1803_v62  ;;  %v2186_v62 = vld [vmem:[#allocation2 + $0x1a8] ss:$16 sps:$4 sm:$0xff]  }
 0x245   :  { %v2269_v4 = vpop.eup %2268  ;;  %v532_v5 = vmul.f32 %v2267_v1, %v1805_v0  ;;  %v2189_v63 = vld [vmem:[#allocation2 + $0x3a8] ss:$16 sps:$4 sm:$0xff]   ;;  %v2194_v0 = vld [vmem:[#allocation2 + $0x18c] ss:$16 sps:$4 sm:$0xff]  }
 0x246   :  { %v2271_v7 = vpop.eup %2270  ;;  %v534_v8 = vmul.f32 %v528_v2, %v494_v34  ;;  %v526_v9 = vmul.f32 %v2269_v4, %v1802_v3  ;;  %v2144_v34 = vld [vmem:[#allocation2 + $0x88] ss:$16 sps:$4 sm:$0xff]   ;;  %v2197_v1 = vld [vmem:[#allocation2 + $0x38c] ss:$16 sps:$4 sm:$0xff]  }
 0x247   :  { %v536_v10 = vmul.f32 %v532_v5, %v496_v35  ;;  %v530_v11 = vmul.f32 %v2271_v7, %v1804_v6  ;;  %v2147_v35 = vld [vmem:[#allocation2 + $0x288] ss:$16 sps:$4 sm:$0xff]   ;;  %v2200_v4 = vld [vmem:[#allocation2 + $0x16c] ss:$16 sps:$4 sm:$0xff]  }
 0x248   :  { %v538_v12 = vpack.c.bf16 %v534_v8, %v534_v8  ;;  %v533_v13 = vmul.f32 %v526_v9, %v493_v36  ;;  %v2152_v36 = vld [vmem:[#allocation2 + $0x6c] ss:$16 sps:$4 sm:$0xff]   ;;  %v2192_v2 = vld [vmem:[#allocation2 + $0x188] ss:$16 sps:$4 sm:$0xff]  }
 0x249   :  { %v540_v14 = vpack.c.bf16 %v536_v10, %v536_v10  ;;  %v535_v16 = vmul.f32 %v530_v11, %v495_v37  ;;  %v2155_v37 = vld [vmem:[#allocation2 + $0x26c] ss:$16 sps:$4 sm:$0xff]   ;;  %v2195_v3 = vld [vmem:[#allocation2 + $0x388] ss:$16 sps:$4 sm:$0xff]  }
 0x24a   :  { %1234 = vmatprep.mubr.bf16.mxu0 %v538_v12  ;;  %v2482_v21 = vpack.c.bf16 %v533_v13, %v533_v13  ;;  %v2203_v5 = vld [vmem:[#allocation2 + $0x36c] ss:$16 sps:$4 sm:$0xff]   ;;  %v2198_v6 = vld [vmem:[#allocation2 + $0x168] ss:$16 sps:$4 sm:$0xff]  }
 0x24b   :  { %1275 = vmatprep.mubr.bf16.mxu1 %v540_v14  ;;  %v2484_v22 = vpack.c.bf16 %v535_v16, %v535_v16  ;;  %v2201_v7 = vld [vmem:[#allocation2 + $0x368] ss:$16 sps:$4 sm:$0xff]   ;;  %v2206_v8 = vld [vmem:[#allocation2 + $0x14c] ss:$16 sps:$4 sm:$0xff]  }
 0x24c   :  { %1235 = vmatmul.mubr.bf16.vlgmr.msra.gmra.mxu0 %v2482_v21  ;;  %v2209_v9 = vld [vmem:[#allocation2 + $0x34c] ss:$16 sps:$4 sm:$0xff]   ;;  %v2204_v10 = vld [vmem:[#allocation2 + $0x148] ss:$16 sps:$4 sm:$0xff]  }
 0x24d   :  { %1276 = vmatmul.mubr.bf16.vlgmr.msra.gmra.mxu1 %v2484_v22  ;;  %1285 = vmatpush1.bf16.msra.mxu0 %v2126_v15  ;;  %v2207_v11 = vld [vmem:[#allocation2 + $0x348] ss:$16 sps:$4 sm:$0xff]   ;;  %v2215_v13 = vld [vmem:[#allocation2 + $0x32c] ss:$16 sps:$4 sm:$0xff]  }
 0x24e   :  { %1326 = vmatpush1.bf16.msra.mxu1 %v2129_v19  ;;  %1316 = vmatprep.mubr.bf16.mxu0 %v538_v12  ;;  %v2212_v12 = vld [vmem:[#allocation2 + $0x12c] ss:$16 sps:$4 sm:$0xff]   ;;  %v2213_v15 = vld [vmem:[#allocation2 + $0x328] ss:$16 sps:$4 sm:$0xff]  }
 0x24f   :  { %1357 = vmatprep.mubr.bf16.mxu1 %v540_v14  ;;  %1286 = vmatprep.subr.bf16.mxu0 %v2134_v24  ;;  %v2210_v14 = vld [vmem:[#allocation2 + $0x128] ss:$16 sps:$4 sm:$0xff]   ;;  %v2218_v16 = vld [vmem:[#allocation2 + $0x10c] ss:$16 sps:$4 sm:$0xff]  }
 0x250   :  { %1327 = vmatprep.subr.bf16.mxu1 %v2137_v25  ;;  %v2221_v19 = vld [vmem:[#allocation2 + $0x30c] ss:$16 sps:$4 sm:$0xff]   ;;  %v2216_v24 = vld [vmem:[#allocation2 + $0x108] ss:$16 sps:$4 sm:$0xff]  }
 0x251   :  { %1287 = vmatpush1.bf16.msra.mxu0 %v2132_v26  ;;  %v2219_v25 = vld [vmem:[#allocation2 + $0x308] ss:$16 sps:$4 sm:$0xff]  }
 0x252   :  { %1328 = vmatpush1.bf16.msra.mxu1 %v2135_v27  ;;  %1288 = vmatprep.subr.bf16.mxu0 %v2140_v28 }
 0x253   :  { %1329 = vmatprep.subr.bf16.mxu1 %v2143_v29 }
 0x255   :  { %1289 = vmatpush1.bf16.msra.mxu0 %v2138_v30 }
 0x256   :  { %1330 = vmatpush1.bf16.msra.mxu1 %v2141_v31  ;;  %1290 = vmatprep.subr.bf16.mxu0 %v2146_v32 }
 0x257   :  { %1331 = vmatprep.subr.bf16.mxu1 %v2149_v33 }
 0x259   :  { %1291 = vmatpush1.bf16.msra.mxu0 %v2144_v34  ;;  %v191_v34 = vld [vmem:[%s2647_s6] sm:$0xf] }
 0x25a   :  { %1332 = vmatpush1.bf16.msra.mxu1 %v2147_v35  ;;  %1292 = vmatprep.subr.bf16.mxu0 %v2152_v36  ;;  %v549_v35 = vrot.slane %v191_v34, %v2432_v20  ;;  %v545_v36 = vrot.slane %v191_v34, %v2425_v17 }
 0x25b   :  { %1333 = vmatprep.subr.bf16.mxu1 %v2155_v37 }
 0x25d   :  { %1293 = vmatpush1.bf16.msra.mxu0 %v2150_v38 }
 0x25e   :  { %1334 = vmatpush1.bf16.msra.mxu1 %v2153_v39  ;;  %1294 = vmatprep.subr.bf16.mxu0 %v2158_v40  ;;  %v557_v40 = vrot.slane %v191_v34, %v2436_v23 }
 0x25f   :  { %1335 = vmatprep.subr.bf16.mxu1 %v2161_v41 }
 0x261   :  { %1295 = vmatpush1.bf16.msra.mxu0 %v2156_v42 }
 0x262   :  { %1336 = vmatpush1.bf16.msra.mxu1 %v2159_v48  ;;  %1296 = vmatprep.subr.bf16.mxu0 %v2164_v43 }
 0x263   :  { %1337 = vmatprep.subr.bf16.mxu1 %v2167_v50 }
 0x265   :  { %1297 = vmatpush1.bf16.msra.mxu0 %v2162_v47 }
 0x266   :  { %1338 = vmatpush1.bf16.msra.mxu1 %v2165_v49  ;;  %1298 = vmatprep.subr.bf16.mxu0 %v2170_v44 }
 0x267   :  { %1339 = vmatprep.subr.bf16.mxu1 %v2173_v45 }
 0x269   :  { %1299 = vmatpush1.bf16.msra.mxu0 %v2168_v46 }
 0x26a   :  { %1340 = vmatpush1.bf16.msra.mxu1 %v2171_v51  ;;  %1300 = vmatprep.subr.bf16.mxu0 %v2176_v52 }
 0x26b   :  { %1341 = vmatprep.subr.bf16.mxu1 %v2179_v53 }
 0x26d   :  { %1301 = vmatpush2.bf16.msra.mxu0 %v2174_v54 }
 0x26e   :  { %1342 = vmatpush2.bf16.msra.mxu1 %v2177_v55  ;;  %1302 = vmatprep.subr.bf16.mxu0 %v2182_v56 }
 0x26f   :  { %1343 = vmatprep.subr.bf16.mxu1 %v2185_v57 }
 0x271   :  { %1303 = vmatpush2.bf16.msra.mxu0 %v2180_v58 }
 0x272   :  { %1344 = vmatpush2.bf16.msra.mxu1 %v2183_v59  ;;  %1304 = vmatprep.subr.bf16.mxu0 %v2188_v60 }
 0x273   :  { %1345 = vmatprep.subr.bf16.mxu1 %v2191_v61 }
 0x275   :  { %1305 = vmatpush2.bf16.msra.mxu0 %v2186_v62 }
 0x276   :  { %1346 = vmatpush2.bf16.msra.mxu1 %v2189_v63  ;;  %1306 = vmatprep.subr.bf16.mxu0 %v2194_v0 }
 0x277   :  { %1347 = vmatprep.subr.bf16.mxu1 %v2197_v1 }
 0x279   :  { %1307 = vmatpush2.bf16.msra.mxu0 %v2192_v2 }
 0x27a   :  { %1348 = vmatpush2.bf16.msra.mxu1 %v2195_v3  ;;  %1308 = vmatprep.subr.bf16.mxu0 %v2200_v4 }
 0x27b   :  { %1349 = vmatprep.subr.bf16.mxu1 %v2203_v5 }
 0x27d   :  { %1309 = vmatpush2.bf16.msra.mxu0 %v2198_v6 }
 0x27e   :  { %1350 = vmatpush2.bf16.msra.mxu1 %v2201_v7  ;;  %1310 = vmatprep.subr.bf16.mxu0 %v2206_v8 }
 0x27f   :  { %1351 = vmatprep.subr.bf16.mxu1 %v2209_v9 }
 0x281   :  { %1311 = vmatpush2.bf16.msra.mxu0 %v2204_v10 }
 0x282   :  { %1352 = vmatpush2.bf16.msra.mxu1 %v2207_v11  ;;  %1312 = vmatprep.subr.bf16.mxu0 %v2212_v12 }
 0x283   :  { %1353 = vmatprep.subr.bf16.mxu1 %v2215_v13  ;;  %v2222_v13 = vld [vmem:[%s2650_s9 + $0x78] sm:$0xff]  }
 0x285   :  { %1313 = vmatpush2.bf16.msra.mxu0 %v2210_v14  ;;  %v2223_v14 = vld [vmem:[%s2650_s9 + $0xf8] sm:$0xff]  }
 0x286   :  { %1354 = vmatpush2.bf16.msra.mxu1 %v2213_v15  ;;  %1314 = vmatprep.subr.bf16.mxu0 %v2218_v16  ;;  %v2224_v15 = vld [vmem:[%s2650_s9 + $0x38] sm:$0xff]  }
 0x287   :  { %1355 = vmatprep.subr.bf16.mxu1 %v2221_v19  ;;  %v2225_v16 = vld [vmem:[%s2650_s9 + $0xb8] sm:$0xff]   ;;  %v2226_v19 = vld [vmem:[%s2650_s9 + $0x70] sm:$0xff]  }
 0x289   :  { %1315 = vmatpush2.bf16.msra.mxu0 %v2216_v24  ;;  %v2227_v24 = vld [vmem:[%s2650_s9 + $0xf0] sm:$0xff]  }
 0x28a   :  { %1356 = vmatpush2.bf16.msra.mxu1 %v2219_v25  ;;  %1971 = vmatprep.subr.bf16.mxu0 %v2222_v13  ;;  %v2228_v25 = vld [vmem:[%s2650_s9 + $0x30] sm:$0xff]  }
 0x28b   :  { %1993 = vmatprep.subr.bf16.mxu1 %v2223_v14 }
 0x28c   :  { %1317 = vmatmul.mubr.bf16.vlgmr.msra.gmra.mxu0 %v2482_v21 }
 0x28d   :  { %1358 = vmatmul.mubr.bf16.vlgmr.msra.gmra.mxu1 %v2484_v22  ;;  %v553_v22 = vrot.slane %v191_v34, %v2427_v18  ;;  %1972 = vmatpush3.bf16.msra.mxu0 %v2224_v15  ;;  %v2237_v34 = vld [vmem:[%s2650_s9 + $0xa0] sm:$0xff]  }
 0x28e   :  { %1994 = vmatpush3.bf16.msra.mxu1 %v2225_v16  ;;  %1973 = vmatprep.subr.bf16.mxu0 %v2226_v19 }
 0x28f   :  { %1995 = vmatprep.subr.bf16.mxu1 %v2227_v24 }
 0x291   :  { %1974 = vmatpush3.bf16.msra.mxu0 %v2228_v25 }
 0x30c   :  { %v1236_v26 = vpop.f32.mrf.mxu0 }
 0x30d   :  { %v1277_v27 = vpop.f32.mrf.mxu1  ;;  %v1237_v21 = vadd.f32 %v1236_v26, %v545_v36  ;;  %v2229_v26 = vld [vmem:[%s2650_s9 + $0xb0] sm:$0xff]   ;;  %v2239_v36 = vld [vmem:[%s2650_s9 + $0xd8] sm:$0xff]  }
 0x30e   :  { %v1238_v28 = vpop.f32.mrf.mxu0  ;;  %1996 = vmatpush3.bf16.msra.mxu1 %v2229_v26 }
 0x30f   :  { %v1279_v29 = vpop.f32.mrf.mxu1  ;;  %v1239_v37 = vadd.f32 %v1238_v28, %v549_v35  ;;  %v1278_v39 = vadd.f32 %v1277_v27, %v1237_v21  ;;  %v2230_v27 = vld [vmem:[%s2650_s9 + $0x68] sm:$0xff]   ;;  %v2238_v35 = vld [vmem:[%s2650_s9 + $0x58] sm:$0xff]  }
 0x310   :  { %v1240_v30 = vpop.f32.mrf.mxu0  ;;  %v2231_v28 = vld [vmem:[%s2650_s9 + $0xe8] sm:$0xff]   ;;  %1975 = vmatprep.subr.bf16.mxu0 %v2230_v27  ;;  %v2241_v21 = vld [vmem:[%s2650_s9 + $0x98] sm:$0xff]  }
 0x311   :  { %v1281_v31 = vpop.f32.mrf.mxu1  ;;  %v1280_v38 = vadd.f32 %v1279_v29, %v1239_v37  ;;  %v1366_v47 = vsel %vm411_vm2, %v1278_v39, 0.0  ;;  %v2232_v29 = vld [vmem:[%s2650_s9 + $0x28] sm:$0xff]   ;;  %1997 = vmatprep.subr.bf16.mxu1 %v2231_v28  ;;  %v2240_v37 = vld [vmem:[%s2650_s9 + $0x18] sm:$0xff]  }
 0x312   :  { %v1241_v32 = vpop.f32.mrf.mxu0  ;;  %v2233_v30 = vld [vmem:[%s2650_s9 + $0xa8] sm:$0xff]   ;;  %v2234_v31 = vld [vmem:[%s2650_s9 + $0x60] sm:$0xff]   ;;  %1976 = vmatpush3.bf16.msra.mxu0 %v2232_v29 }
 0x313   :  { %v1282_v33 = vpop.f32.mrf.mxu1  ;;  %v1367_v42 = vsel %vm411_vm2, %v1280_v38, 0.0  ;;  %v2235_v32 = vld [vmem:[%s2650_s9 + $0xe0] sm:$0xff]   ;;  %1998 = vmatpush3.bf16.msra.mxu1 %v2233_v30  ;;  %1977 = vmatprep.subr.bf16.mxu0 %v2234_v31 }
 0x314   :  { %v1368_v46 = vadd.f32 %v1367_v42, %v1366_v47  ;;  %v2236_v33 = vld [vmem:[%s2650_s9 + $0x20] sm:$0xff]   ;;  %1999 = vmatprep.subr.bf16.mxu1 %v2235_v32  ;;  %v2247_v42 = vld [vmem:[%s2650_s9 + $0xc8] sm:$0xff]  }
 0x315   :  { %v2251_v47 = vld [vmem:[%s2650_s9 + $0xc0] sm:$0xff]  }
 0x316   :  { %1978 = vmatpush3.bf16.msra.mxu0 %v2236_v33 }
 0x317   :  { %2000 = vmatpush3.bf16.msra.mxu1 %v2237_v34  ;;  %1979 = vmatprep.subr.bf16.mxu0 %v2238_v35 }
 0x318   :  { %2001 = vmatprep.subr.bf16.mxu1 %v2239_v36 }
 0x31a   :  { %1980 = vmatpush3.bf16.msra.mxu0 %v2240_v37 }
 0x31b   :  { %2002 = vmatpush3.bf16.msra.mxu1 %v2241_v21 }
 0x34c   :  { %v1318_v41 = vpop.f32.mrf.mxu0 }
 0x34d   :  { %v1319_v48 = vadd.f32 %v1318_v41, %v553_v22  ;;  %v1359_v43 = vpop.f32.mrf.mxu1  ;;  %v2243_v22 = vld [vmem:[%s2650_s9 + $0xd0] sm:$0xff]   ;;  %v2246_v41 = vld [vmem:[%s2650_s9 + $0x48] sm:$0xff]  }
 0x34e   :  { %v1320_v50 = vpop.f32.mrf.mxu0  ;;  %2003 = vmatprep.subr.bf16.mxu1 %v2243_v22 }
 0x34f   :  { %v1360_v49 = vadd.f32 %v1359_v43, %v1319_v48  ;;  %v1321_v44 = vadd.f32 %v1320_v50, %v557_v40  ;;  %v1361_v45 = vpop.f32.mrf.mxu1  ;;  %v2245_v40 = vld [vmem:[%s2650_s9 + $0x90] sm:$0xff]   ;;  %v2248_v48 = vld [vmem:[%s2650_s9 + $0x8] sm:$0xff]   ;;  %v2250_v50 = vld [vmem:[%s2650_s9 + $0x40] sm:$0xff]  }
 0x350   :  { %v1322_v51 = vpop.f32.mrf.mxu0  ;;  %2004 = vmatpush3.bf16.msra.mxu1 %v2245_v40  ;;  %v2249_v43 = vld [vmem:[%s2650_s9 + $0x88] sm:$0xff]  }
 0x351   :  { %v1369_v52 = vsel %vm411_vm2, %v1360_v49, 0.0  ;;  %v1362_v53 = vadd.f32 %v1361_v45, %v1321_v44  ;;  %v1363_v54 = vpop.f32.mrf.mxu1  ;;  %2005 = vmatprep.subr.bf16.mxu1 %v2247_v42  ;;  %v2253_v44 = vld [vmem:[%s2650_s9 + $0x80] sm:$0xff]  }
 0x352   :  { %v1323_v55 = vpop.f32.mrf.mxu0  ;;  %v1370_v56 = vadd.f32 %v1369_v52, %v1368_v46  ;;  %v192_v52 = vld [vmem:[%s2648_s7] sm:$0xf] }
 0x353   :  { %v1364_v57 = vpop.f32.mrf.mxu1  ;;  %v1371_v58 = vsel %vm411_vm2, %v1362_v53, 0.0  ;;  %v1408_v54 = vrot.slane %v192_v52, %v2432_v20  ;;  %v1416_v55 = vrot.slane %v192_v52, %v2436_v23 }
 0x354   :  { %v1372_v59 = vadd.f32 %v1371_v58, %v1370_v56  ;;  %2006 = vmatpush3.bf16.msra.mxu1 %v2249_v43  ;;  %v1404_v56 = vrot.slane %v192_v52, %v2425_v17  ;;  %v1412_v57 = vrot.slane %v192_v52, %v2427_v18 }
 0x355   :  { %2007 = vmatprep.subr.bf16.mxu1 %v2251_v47 }
 0x356   :  { %1373 = vadd.xlane.f32.xlu1 %v1372_v59 }
 0x358   :  { %2008 = vmatpush3.bf16.msra.mxu1 %v2253_v44 }
 0x3df   :  { %v1374_v60 = vpop.xlane.xlu1 %1373 }
 0x3e0   :  { %v1375_v61 = vmul.f32 0.001953125, %v1374_v60 }
 0x3e2   :  { %v2501_v62 = vsub.f32 %v1278_v39, %v1375_v61  ;;  %v2503_v63 = vsub.f32 %v1280_v38, %v1375_v61  ;;  %v2505_v0 = vsub.f32 %v1360_v49, %v1375_v61  ;;  %v2507_v1 = vsub.f32 %v1362_v53, %v1375_v61  ;;  %v2242_v38 = vld [vmem:[%s2650_s9 + $0x50] sm:$0xff]   ;;  %v2252_v49 = vld [vmem:[%s2650_s9] sm:$0xff]  }
 0x3e3   :  { %v2244_v39 = vld [vmem:[%s2650_s9 + $0x10] sm:$0xff]   ;;  %1981 = vmatprep.subr.bf16.mxu0 %v2242_v38  ;;  %v193_v53 = vld [vmem:[%s2649_s8] sm:$0xf]  ;;  %s2340_s9 = smov [#allocation5]  }
 0x3e4   :  { %v1380_v2 = vmul.f32 %v2501_v62, %v2501_v62  ;;  %v1381_v3 = vmul.f32 %v2503_v63, %v2503_v63  ;;  %v1382_v4 = vmul.f32 %v2505_v0, %v2505_v0  ;;  %v1383_v5 = vmul.f32 %v2507_v1, %v2507_v1  ;;  %1982 = vmatpush3.bf16.msra.mxu0 %v2244_v39  ;;  %s1781_s16 = sshll.u32 %s2340_s9, 4  ;;  %s1782_s16 = int_to_ptr.vmem [resolvable:$true] %s1781_s16 }
 0x3e5   :  { %1983 = vmatprep.subr.bf16.mxu0 %v2246_v41  ;;  %v1433_v59 = vrot.slane %v193_v53, %v2432_v20  ;;  %v1441_v60 = vrot.slane %v193_v53, %v2436_v23  ;;  %v1429_v61 = vrot.slane %v193_v53, %v2425_v17  ;;  %s2312_s17 = scalar_lea.vmem %s1782_s16, 32  ;;  %p2317_p6 = scmp.lt.s32.totalorder %s1782_s16, %s1782_s16 }
 0x3e6   :  { %v1384_v6 = vsel %vm411_vm2, %v1380_v2, 0.0  ;;  %v1385_v7 = vsel %vm411_vm2, %v1381_v3, 0.0  ;;  %v1387_v9 = vsel %vm411_vm2, %v1382_v4, 0.0  ;;  %v1389_v11 = vsel %vm411_vm2, %v1383_v5, 0.0  ;;  %p2313_p5 = scmp.ne.s32.totalorder %s1782_s16, %s2312_s17  ;;  %p2318_p7 = scmp.lt.s32.totalorder %s2312_s17, %s2312_s17 }
 0x3e7   :  { %v1386_v8 = vadd.f32 %v1385_v7, %v1384_v6  ;;  %v1437_v2 = vrot.slane %v193_v53, %v2427_v18 }
 0x3e8   :  { %1984 = vmatpush3.bf16.msra.mxu0 %v2248_v48  ;;  %p2319_p8 = por %p2318_p7, %p2317_p6 }
 0x3e9   :  { %v1388_v10 = vadd.f32 %v1387_v9, %v1386_v8  ;;  %1985 = vmatprep.subr.bf16.mxu0 %v2250_v50 }
 0x3ea   :  { %p2320_p9 = pnand %p2319_p8, %p2313_p5 }
 0x3eb   :  { %v1390_v12 = vadd.f32 %v1389_v11, %v1388_v10 }
 0x3ec   :  { %1986 = vmatpush3.bf16.msra.mxu0 %v2252_v49 }
 0x3ed   :  { %1391 = vadd.xlane.f32.xlu1 %v1390_v12 }
 0x476   :  { %v1392_v45 = vpop.xlane.xlu1 %1391 }
 0x477   :  { %v1393_v46 = vmul.f32 0.001953125, %v1392_v45 }
 0x479   :  { %v1394_v51 = vadd.f32 1e-05, %v1393_v46 }
 0x47b   :  { %2272 = vrsqrt.f32 %v1394_v51 }
 0x488   :  { %v2273_v58 = vpop.eup %2272 }
 0x489   :  { %v1397_v3 = vmul.f32 %v2273_v58, %v2503_v63  ;;  %v1399_v4 = vmul.f32 %v2273_v58, %v2507_v1  ;;  %v1396_v5 = vmul.f32 %v2273_v58, %v2501_v62  ;;  %v1398_v6 = vmul.f32 %v2273_v58, %v2505_v0 }
 0x48b   :  { %v1422_v7 = vmul.f32 %v1408_v54, %v1397_v3  ;;  %v1424_v8 = vmul.f32 %v1416_v55, %v1399_v4  ;;  %v1421_v9 = vmul.f32 %v1404_v56, %v1396_v5  ;;  %v1423_v10 = vmul.f32 %v1412_v57, %v1398_v6  ;;  %v1938_v57 = vld [vmem:[%s2651_s10] ss:$0 sm:$0xff] }
 0x48d   :  { %v1447_v11 = vadd.f32 %v1433_v59, %v1422_v7  ;;  %v1449_v20 = vadd.f32 %v1441_v60, %v1424_v8  ;;  %v1446_v12 = vadd.f32 %v1429_v61, %v1421_v9  ;;  %v1448_v23 = vadd.f32 %v1437_v2, %v1423_v10 }
 0x48f   :  { %v1451_v13 = vmin.f32 %v1447_v11, 20.0  ;;  %v1453_v17 = vmin.f32 %v1449_v20, 20.0  ;;  %v1450_v14 = vmin.f32 %v1446_v12, 20.0  ;;  %v1452_v18 = vmin.f32 %v1448_v23, 20.0 }
 0x491   :  { %v1456_v15 = vmul.f32 1.442695, %v1451_v13  ;;  %v1460_v63 = vmul.f32 1.442695, %v1453_v17  ;;  %v1454_v16 = vmul.f32 1.442695, %v1450_v14 }
 0x492   :  { %v1458_v1 = vmul.f32 1.442695, %v1452_v18 }
 0x493   :  { %2274 = vpow2.f32 %v1456_v15 }
 0x494   :  { %2276 = vpow2.f32 %v1460_v63 }
 0x495   :  { %2278 = vpow2.f32 %v1454_v16 }
 0x496   :  { %2280 = vpow2.f32 %v1458_v1 }
 0x4a0   :  { %v2275_v62 = vpop.eup %2274 }
 0x4a1   :  { %v2277_v0 = vpop.eup %2276  ;;  %v1463_v19 = vadd.f32 1.0, %v2275_v62 }
 0x4a2   :  { %v2279_v24 = vpop.eup %2278  ;;  %v1465_v25 = vadd.f32 1.0, %v2277_v0 }
 0x4a3   :  { %v2281_v26 = vpop.eup %2280  ;;  %v1467_v27 = vmul.f32 %v1463_v19, %v1463_v19  ;;  %v1462_v28 = vadd.f32 1.0, %v2279_v24 }
 0x4a4   :  { %v1469_v29 = vmul.f32 %v1465_v25, %v1465_v25  ;;  %v1464_v30 = vadd.f32 1.0, %v2281_v26 }
 0x4a5   :  { %v1475_v31 = vadd.f32 1.0, %v1467_v27  ;;  %v1466_v32 = vmul.f32 %v1462_v28, %v1462_v28  ;;  %v1935_v37 = vadd.f32 -1.0, %v1467_v27 }
 0x4a6   :  { %v1477_v33 = vadd.f32 1.0, %v1469_v29  ;;  %v1468_v34 = vmul.f32 %v1464_v30, %v1464_v30  ;;  %v1937_v38 = vadd.f32 -1.0, %v1469_v29 }
 0x4a7   :  { %2282 = vrcp.f32 %v1475_v31  ;;  %v1474_v35 = vadd.f32 1.0, %v1466_v32  ;;  %v1934_v40 = vadd.f32 -1.0, %v1466_v32 }
 0x4a8   :  { %2284 = vrcp.f32 %v1477_v33  ;;  %v1476_v36 = vadd.f32 1.0, %v1468_v34  ;;  %v1936_v48 = vadd.f32 -1.0, %v1468_v34 }
 0x4a9   :  { %2286 = vrcp.f32 %v1474_v35 }
 0x4aa   :  { %2288 = vrcp.f32 %v1476_v36 }
 0x4b4   :  { %v2283_v21 = vpop.eup %2282 }
 0x4b5   :  { %v2285_v22 = vpop.eup %2284  ;;  %v1481_v39 = vmul.f32 %v2283_v21, %v1935_v37 }
 0x4b6   :  { %v2287_v41 = vpop.eup %2286  ;;  %v1485_v42 = vmul.f32 %v2285_v22, %v1937_v38 }
 0x4b7   :  { %v2289_v43 = vpop.eup %2288  ;;  %v1487_v50 = vmul.f32 %v1481_v39, %v1447_v11  ;;  %v1479_v47 = vmul.f32 %v2287_v41, %v1934_v40 }
 0x4b8   :  { %v1489_v49 = vmul.f32 %v1485_v42, %v1449_v20  ;;  %v1483_v44 = vmul.f32 %v2289_v43, %v1936_v48 }
 0x4b9   :  { %v1491_v45 = vpack.c.bf16 %v1487_v50, %v1487_v50  ;;  %v1486_v46 = vmul.f32 %v1479_v47, %v1446_v12 }
 0x4ba   :  { %v1493_v51 = vpack.c.bf16 %v1489_v49, %v1489_v49  ;;  %v1488_v52 = vmul.f32 %v1483_v44, %v1448_v23 }
 0x4bb   :  { %1724 = vmatprep.mubr.bf16.mxu0 %v1491_v45  ;;  %v1490_v53 = vpack.c.bf16 %v1486_v46, %v1486_v46 }
 0x4bc   :  { %1764 = vmatprep.mubr.bf16.mxu1 %v1493_v51  ;;  %v1492_v54 = vpack.c.bf16 %v1488_v52, %v1488_v52 }
 0x4bd   :  { %1725 = vmatmul.mubr.bf16.vlgmr.msra.gmra.mxu0 %v1490_v53 }
 0x4be   :  { %1765 = vmatmul.mubr.bf16.vlgmr.msra.gmra.mxu1 %v1492_v54 }
 0x57d   :  { %v1987_v55 = vpop.f32.mrf.mxu0 }
 0x57e   :  { %v2009_v56 = vpop.f32.mrf.mxu1 }
 0x57f   :  { %v1988_v58 = vpop.f32.mrf.mxu0 }
 0x580   :  { %v1989_v59 = vadd.f32 %v1988_v58, %v1987_v55  ;;  %v2010_v60 = vpop.f32.mrf.mxu1 }
 0x581   :  { %v1990_v61 = vpop.f32.mrf.mxu0  ;;  %v2011_v3 = vadd.f32 %v2010_v60, %v2009_v56 }
 0x582   :  { %v1727_v2 = vadd.f32 %v1989_v59, %v1938_v57  ;;  %v2012_v4 = vpop.f32.mrf.mxu1 }
 0x583   :  { %v1991_v5 = vpop.f32.mrf.mxu0 }
 0x584   :  { %v1767_v6 = vadd.f32 %v2011_v3, %v1727_v2  ;;  %v2013_v7 = vpop.f32.mrf.mxu1 }
 0x586   :  { %2290 = vtanh.f32 %v1767_v6 }
 0x593   :  { %v2291_v8 = vpop.eup %2290 }
 0x594   :  { %1774 = vst.msk [vmem:[#allocation5] sm:$0x3] %vm1773_vm3, %v2291_v8 }
 0x595   :  { %2323 = shalt.err (!%p2320_p9)
}
 0x596   :  { %1784 = dma.vmem_to_hbm [thread:$0]  %s1782_s16, 32, %s2652_s11, [#allocation4]  }
 0x597   :  { %2334 = dma.done.wait [#allocation4], 32  }
 0x598   :  { %2335 = vsyncadd [#allocation4], 4294967264 }
 0x599   :  { %1788 = vsyncpa [#allocation3], 1 }
 0x59a   :  { %1789 = vsyncpa [#allocation4], 1 }

</bundles_post_ra>
